<compile_context>
chip_gen: v6e
topology: v6e:2x2x1
jax: 0.10.0
libtpu: 0.0.40
codegen_flags: <defaults>
</compile_context>

<pallas_src>
import math

import jax
import jax.numpy as jnp
from jax.experimental import pallas as pl
from jax.experimental.pallas import tpu as pltpu


def _round_up(n: int, m: int) -> int:
    return ((n + m - 1) // m) * m


def _sub(n: int) -> int:
    """f32 sublane padding (second-to-last dim pads to a multiple of 8)."""
    return _round_up(n, 8)


def _encoder_kernel(xT_ref, w1_ref, b1_ref, w2_ref, b2_ref, w3_ref, b3_ref,
                    codeT_ref):
    """One batch tile: code^T = W3ᵀ·relu(W2ᵀ·relu(W1ᵀ·xᵀ + b1) + b2) + b3.

    Everything stays in f32 (MXU accumulation via preferred_element_type);
    bias adds and ReLU run on the VPU with batch on the lane axis.
    """
    xT = xT_ref[...]                                                     # [Nin, TB]
    h = jnp.dot(w1_ref[...], xT, preferred_element_type=jnp.float32)    # [20,  TB]
    h = jnp.maximum(h + b1_ref[...], 0.0)
    h = jnp.dot(w2_ref[...], h, preferred_element_type=jnp.float32)     # [10,  TB]
    h = jnp.maximum(h + b2_ref[...], 0.0)
    code = jnp.dot(w3_ref[...], h, preferred_element_type=jnp.float32)  # [cd,  TB]
    codeT_ref[...] = (code + b3_ref[...]).astype(codeT_ref.dtype)


def _tile_cols_bytes(num_inputs: int, code_dim: int) -> int:
    """VMEM bytes needed per batch column: double-buffered x and code tiles
    plus the sublane-padded f32 activation temporaries [20,TB],[10,TB],[cd,TB]."""
    return 4 * (2 * _sub(num_inputs) + 2 * _sub(code_dim)
                + _sub(20) + _sub(10) + _sub(code_dim))


def _choose_tile_b(batch: int, num_inputs: int, code_dim: int,
                   max_tile_b=None) -> int:
    """Pick the lane-dense batch tile.

    As large as comfortably fits a conservative VMEM budget (amortizes the
    ~0.35 us per-step pipeline overhead), never bigger than round_up(B, 128)
    (no padding blow-up), and split in two when a single tile would cover the
    whole batch but each half still moves >= 1 MiB of x (so the "parallel"
    grid axis can shard across v7x's two TensorCores).
    """
    b_up = _round_up(max(batch, 1), 128)

    try:
        vmem_cap = int(getattr(pltpu.get_tpu_info(), "vmem_capacity_bytes",
                               64 << 20))
    except Exception:
        vmem_cap = 64 << 20
    # Streamed-tile budget: safe on every generation (v7x: 64 MiB physical,
    # 32 MiB scoped per TensorCore); ~20 MiB of tiles is already plenty to
    # amortize per-step overhead even at v7x's ~3.2 TB/s HBM.
    budget = max(min(vmem_cap // 2, 20 << 20), 4 << 20)

    per_col = _tile_cols_bytes(num_inputs, code_dim)
    cap = max((budget // per_col) // 128 * 128, 128)
    if max_tile_b is not None:
        cap = max(min(cap, _round_up(int(max_tile_b), 128)), 128)

    tile = min(cap, b_up)

    # Megacore (v7x): keep >= 2 grid steps when each half tile is still big
    # enough (>= ~1 MiB of x traffic) to stay overhead-amortized.
    half = _round_up(-(-b_up // 2), 128)
    if tile >= b_up and half * num_inputs * 4 >= (1 << 20):
        tile = half
    return tile


def encoder_3_forward_lane_major(xT, params, *, max_tile_b=None):
    """Core entry point (no wrapper layout passes).

    xT: [num_inputs, B] float32 (features on sublanes, batch on lanes).
    Returns code^T: [code_dim, B] float32.
    Producers that can emit x feature-major / consumers that accept code^T
    should call this directly to avoid the two extra HBM passes that
    `encoder_3_forward` spends on transposes.
    """
    num_inputs, B = xT.shape
    code_dim = params["w3"].shape[1]

    TILE_B = _choose_tile_b(B, num_inputs, code_dim, max_tile_b)
    B_pad = _round_up(B, TILE_B)

    xT = xT.astype(jnp.float32)
    if B_pad != B:
        xT = jnp.pad(xT, ((0, 0), (0, B_pad - B)))

    # Weights pre-transposed to [out, in]; biases as column vectors.
    w1t = params["w1"].T.astype(jnp.float32)              # [20, num_inputs]
    w2t = params["w2"].T.astype(jnp.float32)              # [10, 20]
    w3t = params["w3"].T.astype(jnp.float32)              # [code_dim, 10]
    b1 = params["b1"].reshape(-1, 1).astype(jnp.float32)  # [20, 1]
    b2 = params["b2"].reshape(-1, 1).astype(jnp.float32)  # [10, 1]
    b3 = params["b3"].reshape(-1, 1).astype(jnp.float32)  # [code_dim, 1]

    def _resident(arr):
        # Constant index_map -> block stays resident in VMEM across all tiles.
        return pl.BlockSpec(arr.shape, lambda i: (0, 0))

    in_specs = [
        pl.BlockSpec((num_inputs, TILE_B), lambda i: (0, i)),  # streamed x^T tile
        _resident(w1t), _resident(b1),
        _resident(w2t), _resident(b2),
        _resident(w3t), _resident(b3),
    ]
    out_specs = pl.BlockSpec((code_dim, TILE_B), lambda i: (0, i))

    # Explicit VMEM budget: resident params + streamed/temporary tiles + headroom.
    resident = 4 * sum(int(a.size) for a in (w1t, w2t, w3t, b1, b2, b3))
    tiles = _tile_cols_bytes(num_inputs, code_dim) * TILE_B
    vmem_limit = int(max(resident + tiles + (6 << 20), 16 << 20))

    codeT = pl.pallas_call(
        _encoder_kernel,
        out_shape=jax.ShapeDtypeStruct((code_dim, B_pad), jnp.float32),
        grid=(B_pad // TILE_B,),
        in_specs=in_specs,
        out_specs=out_specs,
        compiler_params=pltpu.CompilerParams(
            dimension_semantics=("parallel",),   # v7x: shard batch tiles over both TCs
            vmem_limit_bytes=vmem_limit,
        ),
    )(xT, w1t, b1, w2t, b2, w3t, b3)

    return codeT[:, :B] if B_pad != B else codeT


def encoder_3_forward(x, params, *, max_tile_b=None):
    """PyTorch-shaped entry: x [B, num_inputs] f32 -> code [B, code_dim] f32."""
    codeT = encoder_3_forward_lane_major(x.T, params, max_tile_b=max_tile_b)
    return codeT.T


# ----------------------------- init & reference -----------------------------

def _xavier_uniform(key, fan_in, fan_out):
    """nn.init.xavier_uniform_ (gain=1) generated directly in (in, out) layout."""
    bound = math.sqrt(6.0 / (fan_in + fan_out))
    return jax.random.uniform(key, (fan_in, fan_out), jnp.float32,
                              minval=-bound, maxval=bound)


def init_params(key, num_inputs, code_dim):
    dims = [(num_inputs, 20), (20, 10), (10, code_dim)]
    keys = jax.random.split(key, len(dims))
    params = {}
    for i, ((fi, fo), k) in enumerate(zip(dims, keys), start=1):
        params[f"w{i}"] = _xavier_uniform(k, fi, fo)        # [in, out]
        params[f"b{i}"] = jnp.full((fo,), 0.01, jnp.float32)
    return params


def _reference_forward(x, params):
    """Pure-JAX f32 reference matching the PyTorch module's semantics."""
    hi = jax.lax.Precision.HIGHEST
    h = jnp.maximum(jnp.dot(x, params["w1"], precision=hi) + params["b1"], 0.0)
    h = jnp.maximum(jnp.dot(h, params["w2"], precision=hi) + params["b2"], 0.0)
    return jnp.dot(h, params["w3"], precision=hi) + params["b3"]


if __name__ == "__main__":
    num_inputs, code_dim = 32, 4

    key = jax.random.PRNGKey(0)
    k_params, k_x1, k_x2 = jax.random.split(key, 3)
    params = init_params(k_params, num_inputs, code_dim)

    # Small batch: single grid step (padded up to one 128-lane tile).
    x_small = jax.random.normal(k_x1, (8, num_inputs), jnp.float32)
    code_small = jax.block_until_ready(encoder_3_forward(x_small, params))
    ref_small = _reference_forward(x_small, params)
    assert code_small.shape == (8, code_dim)
    assert jnp.allclose(code_small, ref_small, atol=1e-3, rtol=1e-3)
    assert float(jnp.max(jnp.abs(code_small - ref_small))) < 1e-3

    # Larger, non-tile-multiple batch with a forced small tile: exercises the
    # multi-step pipelined grid (4 steps) and the batch-padding path while the
    # test shapes stay small.
    x_big = jax.random.normal(k_x2, (1000, num_inputs), jnp.float32)
    code_big = jax.block_until_ready(
        encoder_3_forward(x_big, params, max_tile_b=256))
    ref_big = _reference_forward(x_big, params)
    assert code_big.shape == (1000, code_dim)
    assert jnp.allclose(code_big, ref_big, atol=1e-3, rtol=1e-3)

    # Default auto-tiled path (production configuration) on the same input.
    code_auto = jax.block_until_ready(encoder_3_forward(x_big, params))
    assert code_auto.shape == (1000, code_dim)
    assert jnp.allclose(code_auto, ref_big, atol=1e-3, rtol=1e-3)

    print("KERNEL_OK")
</pallas_src>

<mosaic_0001>
module attributes {stable_mosaic.version = 11 : i64} {
  func.func @_encoder_kernel(%arg0: i32, %arg1: memref<32x128xf32, #tpu.memory_space<vmem>>, %arg2: memref<20x32xf32, #tpu.memory_space<vmem>>, %arg3: memref<20x1xf32, #tpu.memory_space<vmem>>, %arg4: memref<10x20xf32, #tpu.memory_space<vmem>>, %arg5: memref<10x1xf32, #tpu.memory_space<vmem>>, %arg6: memref<4x10xf32, #tpu.memory_space<vmem>>, %arg7: memref<4x1xf32, #tpu.memory_space<vmem>>, %arg8: memref<4x128xf32, #tpu.memory_space<vmem>>) attributes {dimension_semantics = [#tpu.dimension_semantics<parallel>], iteration_bounds = array<i64: 1>, scalar_prefetch = 0 : i64, scratch_operands = 0 : i64, tpu.core_type = #tpu.core_type<tc>, window_params = [{transform_indices = @transform_0, window_bounds = array<i64: 32, 128>}, {pipeline_mode = #tpu.pipeline_mode<synchronous>, transform_indices = @transform_1, window_bounds = array<i64: 20, 32>}, {pipeline_mode = #tpu.pipeline_mode<synchronous>, transform_indices = @transform_2, window_bounds = array<i64: 20, 1>}, {pipeline_mode = #tpu.pipeline_mode<synchronous>, transform_indices = @transform_3, window_bounds = array<i64: 10, 20>}, {pipeline_mode = #tpu.pipeline_mode<synchronous>, transform_indices = @transform_4, window_bounds = array<i64: 10, 1>}, {pipeline_mode = #tpu.pipeline_mode<synchronous>, transform_indices = @transform_5, window_bounds = array<i64: 4, 10>}, {pipeline_mode = #tpu.pipeline_mode<synchronous>, transform_indices = @transform_6, window_bounds = array<i64: 4, 1>}, {transform_indices = @transform_7, window_bounds = array<i64: 4, 128>}]} {
    %c0 = arith.constant 0 : index
    %c0_0 = arith.constant 0 : index
    %0 = vector.load %arg1[%c0, %c0_0] : memref<32x128xf32, #tpu.memory_space<vmem>>, vector<32x128xf32>
    %c0_1 = arith.constant 0 : index
    %c0_2 = arith.constant 0 : index
    %1 = vector.load %arg2[%c0_1, %c0_2] : memref<20x32xf32, #tpu.memory_space<vmem>>, vector<20x32xf32>
    %cst = arith.constant dense<0.000000e+00> : vector<20x128xf32>
    %2 = tpu.matmul %1, %0, %cst {dimension_numbers = #tpu.dot_dimension_numbers<[1], [0], [0], [1], [0, 0, 1, 1], [], []>} : vector<20x32xf32>, vector<32x128xf32>, vector<20x128xf32> -> vector<20x128xf32>
    %c0_3 = arith.constant 0 : index
    %c0_4 = arith.constant 0 : index
    %3 = vector.load %arg3[%c0_3, %c0_4] : memref<20x1xf32, #tpu.memory_space<vmem>>, vector<20x1xf32>
    %4 = vector.broadcast %3 : vector<20x1xf32> to vector<20x128xf32>
    %5 = arith.addf %2, %4 : vector<20x128xf32>
    %cst_5 = arith.constant 0.000000e+00 : f32
    %6 = vector.broadcast %cst_5 : f32 to vector<20x128xf32>
    %7 = arith.maximumf %5, %6 : vector<20x128xf32>
    %c0_6 = arith.constant 0 : index
    %c0_7 = arith.constant 0 : index
    %8 = vector.load %arg4[%c0_6, %c0_7] : memref<10x20xf32, #tpu.memory_space<vmem>>, vector<10x20xf32>
    %cst_8 = arith.constant dense<0.000000e+00> : vector<10x128xf32>
    %9 = tpu.matmul %8, %7, %cst_8 {dimension_numbers = #tpu.dot_dimension_numbers<[1], [0], [0], [1], [0, 0, 1, 1], [], []>} : vector<10x20xf32>, vector<20x128xf32>, vector<10x128xf32> -> vector<10x128xf32>
    %c0_9 = arith.constant 0 : index
    %c0_10 = arith.constant 0 : index
    %10 = vector.load %arg5[%c0_9, %c0_10] : memref<10x1xf32, #tpu.memory_space<vmem>>, vector<10x1xf32>
    %11 = vector.broadcast %10 : vector<10x1xf32> to vector<10x128xf32>
    %12 = arith.addf %9, %11 : vector<10x128xf32>
    %cst_11 = arith.constant 0.000000e+00 : f32
    %13 = vector.broadcast %cst_11 : f32 to vector<10x128xf32>
    %14 = arith.maximumf %12, %13 : vector<10x128xf32>
    %c0_12 = arith.constant 0 : index
    %c0_13 = arith.constant 0 : index
    %15 = vector.load %arg6[%c0_12, %c0_13] : memref<4x10xf32, #tpu.memory_space<vmem>>, vector<4x10xf32>
    %cst_14 = arith.constant dense<0.000000e+00> : vector<4x128xf32>
    %16 = tpu.matmul %15, %14, %cst_14 {dimension_numbers = #tpu.dot_dimension_numbers<[1], [0], [0], [1], [0, 0, 1, 1], [], []>} : vector<4x10xf32>, vector<10x128xf32>, vector<4x128xf32> -> vector<4x128xf32>
    %c0_15 = arith.constant 0 : index
    %c0_16 = arith.constant 0 : index
    %17 = vector.load %arg7[%c0_15, %c0_16] : memref<4x1xf32, #tpu.memory_space<vmem>>, vector<4x1xf32>
    %18 = vector.broadcast %17 : vector<4x1xf32> to vector<4x128xf32>
    %19 = arith.addf %16, %18 : vector<4x128xf32>
    %c0_17 = arith.constant 0 : index
    %c0_18 = arith.constant 0 : index
    %20 = vector.load %arg8[%c0_17, %c0_18] : memref<4x128xf32, #tpu.memory_space<vmem>>, vector<4x128xf32>
    tpu.vector_store %arg8[%c0_17, %c0_18], %19 {strides = array<i32>} : memref<4x128xf32, #tpu.memory_space<vmem>>, vector<4x128xf32>,
    return
  }
  func.func @transform_0(%arg0: i32) -> (i32, i32) {
    %c0_i32 = arith.constant 0 : i32
    %c0_i32_0 = arith.constant 0 : i32
    return %c0_i32, %arg0 : i32, i32
  }
  func.func @transform_1(%arg0: i32) -> (i32, i32) {
    %c0_i32 = arith.constant 0 : i32
    %c0_i32_0 = arith.constant 0 : i32
    %c0_i32_1 = arith.constant 0 : i32
    return %c0_i32, %c0_i32_0 : i32, i32
  }
  func.func @transform_2(%arg0: i32) -> (i32, i32) {
    %c0_i32 = arith.constant 0 : i32
    %c0_i32_0 = arith.constant 0 : i32
    %c0_i32_1 = arith.constant 0 : i32
    return %c0_i32, %c0_i32_0 : i32, i32
  }
  func.func @transform_3(%arg0: i32) -> (i32, i32) {
    %c0_i32 = arith.constant 0 : i32
    %c0_i32_0 = arith.constant 0 : i32
    %c0_i32_1 = arith.constant 0 : i32
    return %c0_i32, %c0_i32_0 : i32, i32
  }
  func.func @transform_4(%arg0: i32) -> (i32, i32) {
    %c0_i32 = arith.constant 0 : i32
    %c0_i32_0 = arith.constant 0 : i32
    %c0_i32_1 = arith.constant 0 : i32
    return %c0_i32, %c0_i32_0 : i32, i32
  }
  func.func @transform_5(%arg0: i32) -> (i32, i32) {
    %c0_i32 = arith.constant 0 : i32
    %c0_i32_0 = arith.constant 0 : i32
    %c0_i32_1 = arith.constant 0 : i32
    return %c0_i32, %c0_i32_0 : i32, i32
  }
  func.func @transform_6(%arg0: i32) -> (i32, i32) {
    %c0_i32 = arith.constant 0 : i32
    %c0_i32_0 = arith.constant 0 : i32
    %c0_i32_1 = arith.constant 0 : i32
    return %c0_i32, %c0_i32_0 : i32, i32
  }
  func.func @transform_7(%arg0: i32) -> (i32, i32) {
    %c0_i32 = arith.constant 0 : i32
    %c0_i32_0 = arith.constant 0 : i32
    return %c0_i32, %arg0 : i32, i32
  }
}

</mosaic_0001>

<bundles_post_ra>
// kernel: tpu_custom_call.1
= control target key start
LH: loop header
LB: loop body
LE: loop exit
PB: predicated region body
PF: predicated region fallthrough
CT: control target
= control target key end

     0   :  { %12 = vsyncpa [#allocation3], 0  ;;  %s582_s0 = inlined_call_operand.vmem [shape: f32[32,128], index: 0, kind: input, shape index: {}]   ;;  %s583_s1 = inlined_call_operand.hbm [shape: f32[20,32], index: 1, kind: input, shape index: {}]   ;;  %s584_s2 = inlined_call_operand.vmem [shape: f32[20,1], index: 2, kind: input, shape index: {}]   ;;  %s585_s3 = inlined_call_operand.vmem [shape: f32[10,20], index: 3, kind: input, shape index: {}]   ;;  %s586_s4 = inlined_call_operand.vmem [shape: f32[10,1], index: 4, kind: input, shape index: {}]   ;;  %s587_s5 = inlined_call_operand.vmem [shape: f32[4,10], index: 5, kind: input, shape index: {}]   ;;  %s588_s6 = inlined_call_operand.vmem [shape: f32[4,1], index: 6, kind: input, shape index: {}]   ;;  %s589_s7 = inlined_call_operand.hbm [shape: f32[4,128], index: 7, kind: output, shape index: {}]  }
   0x1   :  { %13 = vsyncpa [#allocation4], 0  ;;  %s471_s24 = smov [#allocation2]  }
   0x2   :  { %s21_s25 = sshll.u32 %s471_s24, 4  ;;  %s22_s25 = int_to_ptr.vmem [resolvable:$true] %s21_s25 }
   0x3   :  { %s435_s26 = scalar_lea.vmem %s22_s25, 384  ;;  %p440_p1 = scmp.lt.s32.totalorder %s22_s25, %s22_s25 }
   0x4   :  { %p436_p0 = scmp.ne.s32.totalorder %s22_s25, %s435_s26  ;;  %p441_p2 = scmp.lt.s32.totalorder %s435_s26, %s435_s26 }
   0x6   :  { %p442_p3 = por %p441_p2, %p440_p1 }
   0x8   :  { %p443_p4 = pnand %p442_p3, %p436_p0 }
   0xa   :  { %446 = shalt.err (!%p443_p4)
}
   0xb   :  { %s472_s27 = smov 128   ;;  %s473_s28 = smov 8  }
   0xc   :  { %27 = dma.hbm_to_vmem [thread:$0]  %s583_s1, 384, %s22_s25, [#allocation3], %s472_s27, %s472_s27, %s473_s28  }
   0xd   :  { %467 = dma.done.wait [#allocation3], 384  }
   0xe   :  { %468 = vsyncadd [#allocation3], 4294966912  ;;  %v474_v0 = vmov 0.0   ;;  %vm475_vm0 = vmmov 0   ;;  %v476_v1 = vmov 0   ;;  %v44_v2 = vld [vmem:[%s582_s0 + $0x18] sm:$0xff] }
   0xf   :  { %385 = vmatprep.subr.mxu0 %v474_v0  ;;  %393 = vmatprep.mubr.msk.f32.mxu0 %vm475_vm0, %v474_v0  ;;  %v43_v3 = vld [vmem:[%s582_s0 + $0x10] sm:$0xff]  ;;  %v42_v4 = vld [vmem:[%s582_s0 + $0x8] sm:$0xff]  ;;  %v48_v6 = vld [vmem:[%s584_s2] sm:$0xff]  ;;  %vm66_vm1 = vcmask 261120   ;;  %vm173_vm2 = vcmask 162816   ;;  %vm180_vm3 = vcmask 1043456  }
  0x10   :  { %425 = vset.pattern.permute.xlu0 %v476_v1  ;;  %426 = vset.pattern.permute.xlu1 %v476_v1  ;;  %v50_v5 = vld [vmem:[%s584_s2 + $0x10] sm:$0xf]  ;;  %v41_v7 = vld [vmem:[%s582_s0] sm:$0xff]  ;;  %v49_v8 = vld [vmem:[%s584_s2 + $0x8] sm:$0xff]  ;;  %vm272_vm4 = vcmask 1041408   ;;  %vm268_vm5 = vcmask 80896  }
  0x11   :  { %386 = vmatpush3.msra.mxu0 %v44_v2  ;;  %63 = vperm.xlu0 %425, %v50_v5   ;;  %v45_v9 = vld [vmem:[#allocation2] sm:$0xff]  ;;  %v162_v10 = vld [vmem:[%s586_s4 + $0x8] sm:$0x3]  ;;  %v47_v14 = vld [vmem:[#allocation2 + $0x10] sm:$0xf]  ;;  %s477_s28 = smov [#allocation5]  }
  0x12   :  { %387 = vmatprep.subr.mxu0 %v474_v0  ;;  %53 = vperm.xlu1 %426, %v48_v6   ;;  %v161_v11 = vld [vmem:[%s586_s4] sm:$0xff]  ;;  %v46_v12 = vld [vmem:[#allocation2 + $0x8] sm:$0xff]  ;;  %s353_s29 = sshll.u32 %s477_s28, 4  ;;  %s354_s29 = int_to_ptr.vmem [resolvable:$true] %s353_s29 }
  0x13   :  { %388 = vmatpush3.msra.mxu0 %v43_v3  ;;  %v262_v13 = vld [vmem:[%s588_s6] sm:$0xf]  ;;  %v160_v31 = vld [vmem:[%s585_s3 + $0x8] sm:$0x3]  ;;  %s447_s30 = scalar_lea.vmem %s354_s29, 64  ;;  %p452_p6 = scmp.lt.s32.totalorder %s354_s29, %s354_s29 }
  0x14   :  { %389 = vmatprep.subr.mxu0 %v474_v0  ;;  %v159_v15 = vld [vmem:[%s585_s3] sm:$0xff]  ;;  %p448_p5 = scmp.ne.s32.totalorder %s354_s29, %s447_s30  ;;  %p453_p7 = scmp.lt.s32.totalorder %s447_s30, %s447_s30 }
  0x15   :  { %390 = vmatpush3.msra.mxu0 %v42_v4  ;;  %58 = vperm.xlu0 %425, %v49_v8   ;;  %v261_v40 = vld [vmem:[%s587_s5] sm:$0xf] }
  0x16   :  { %391 = vmatprep.subr.mxu0 %v474_v0  ;;  %170 = vperm.xlu1 %426, %v162_v10   ;;  %p454_p8 = por %p453_p7, %p452_p6 }
  0x17   :  { %392 = vmatpush3.msra.mxu0 %v41_v7  ;;  %408 = vmatprep.mubr.msk.f32.mxu1 %vm173_vm2, %v159_v15 }
  0x18   :  { %394 = vmatmul.mubr.msk.f32.vlgmr.msra.gmra.mxu0 %vm66_vm1, %v45_v9  ;;  %p455_p9 = pnand %p454_p8, %p448_p5 }
  0x19   :  { %396 = vmatprep.mubr.msk.f32.mxu0 %vm475_vm0, %v474_v0  ;;  %165 = vperm.xlu0 %425, %v161_v11  }
  0x1a   :  { %265 = vperm.xlu1 %426, %v262_v13  }
  0x1c   :  { %397 = vmatmul.mubr.msk.f32.gmra.mxu0 %vm66_vm1, %v46_v12 }
  0x1d   :  { %399 = vmatprep.mubr.msk.f32.mxu0 %vm475_vm0, %v474_v0 }
  0x20   :  { %400 = vmatmul.mubr.msk.f32.gmra.mxu0 %vm66_vm1, %v47_v14 }
  0x8c   :  { %v64_v17 = vpop.permute.xlu0 %63 }
  0x8d   :  { %v54_v21 = vpop.permute.xlu1 %53 }
  0x90   :  { %v59_v22 = vpop.permute.xlu0 %58 }
  0x91   :  { %v171_v32 = vpop.permute.xlu1 %170 }
  0x94   :  { %v166_v35 = vpop.permute.xlu0 %165 }
  0x95   :  { %v266_v41 = vpop.permute.xlu1 %265 }
  0xd8   :  { %v142_v16 = vpop.f32.mrf.mxu0 }
  0xd9   :  { %v143_v27 = vadd.f32 %v142_v16, %v54_v21 }
  0xda   :  { %v395_v18 = vpop.f32.mrf.mxu0 }
  0xdb   :  { %v156_v30 = vmax.f32 %v143_v27, 0.0 }
  0xdc   :  { %v147_v19 = vpop.f32.mrf.mxu0 }
  0xdd   :  { %v148_v24 = vadd.f32 %v147_v19, %v59_v22 }
  0xde   :  { %v398_v20 = vpop.f32.mrf.mxu0 }
  0xdf   :  { %v157_v29 = vmax.f32 %v148_v24, 0.0 }
  0xe0   :  { %v152_v23 = vpop.f32.mrf.mxu0 }
  0xe1   :  { %v153_v25 = vadd.f32 %v152_v23, %v64_v17 }
  0xe2   :  { %v401_v26 = vpop.f32.mrf.mxu0 }
  0xe3   :  { %v158_v28 = vmax.f32 %v153_v25, 0.0 }
  0xe5   :  { %402 = vmatprep.subr.msk.mxu1 %vm180_vm3, %v158_v28 }
  0xe6   :  { %403 = vmatpush3.msk.msra.mxu1 %vm180_vm3, %v158_v28 }
  0xe7   :  { %404 = vmatprep.subr.mxu1 %v157_v29 }
  0xe8   :  { %405 = vmatpush3.msra.mxu1 %v157_v29 }
  0xe9   :  { %406 = vmatprep.subr.mxu1 %v156_v30 }
  0xea   :  { %407 = vmatpush3.msra.mxu1 %v156_v30 }
  0xeb   :  { %409 = vmatmul.mubr.msk.f32.vlgmr.msra.gmra.mxu1 %vm173_vm2, %v160_v31  ;;  %411 = vmatprep.subr.mxu1 %v474_v0 }
  0xec   :  { %415 = vmatprep.mubr.msk.f32.mxu1 %vm475_vm0, %v474_v0 }
 0x1ab   :  { %v410_v33 = vpop.f32.mrf.mxu1 }
 0x1ac   :  { %v256_v34 = vadd.f32 %v410_v33, %v171_v32 }
 0x1ad   :  { %v250_v36 = vpop.f32.mrf.mxu1 }
 0x1ae   :  { %v260_v37 = vmax.f32 %v256_v34, 0.0  ;;  %v251_v38 = vadd.f32 %v250_v36, %v166_v35 }
 0x1b0   :  { %v259_v39 = vmax.f32 %v251_v38, 0.0  ;;  %412 = vmatpush3.msk.msra.mxu1 %vm272_vm4, %v260_v37 }
 0x1b1   :  { %413 = vmatprep.subr.mxu1 %v474_v0 }
 0x1b2   :  { %414 = vmatpush3.msra.mxu1 %v259_v39 }
 0x1b3   :  { %416 = vmatmul.mubr.msk.f32.vlgmr.msra.gmra.mxu1 %vm268_vm5, %v261_v40 }
 0x273   :  { %v342_v42 = vpop.f32.mrf.mxu1 }
 0x274   :  { %v343_v43 = vadd.f32 %v342_v42, %v266_v41 }
 0x275   :  { %v417_v44 = vpop.f32.mrf.mxu1 }
 0x276   :  { %346 = vst [vmem:[#allocation5] sm:$0xf] %v343_v43 }
 0x277   :  { %458 = shalt.err (!%p455_p9)
}
 0x278   :  { %356 = dma.vmem_to_hbm [thread:$0]  %s354_s29, 64, %s589_s7, [#allocation4]  }
 0x279   :  { %469 = dma.done.wait [#allocation4], 64  }
 0x27a   :  { %470 = vsyncadd [#allocation4], 4294967232 }
 0x27b   :  { %360 = vsyncpa [#allocation3], 1 }
 0x27c   :  { %361 = vsyncpa [#allocation4], 1 }

</bundles_post_ra>
